<compile_context>
chip_gen: v5e
topology: v5e:2x2
jax: 0.10.0
libtpu: 0.0.40
codegen_flags: <defaults>
</compile_context>

<pallas_src>
import functools

import jax
import jax.numpy as jnp
from jax.experimental import pallas as pl
from jax.experimental.pallas import tpu as pltpu

OUT_PAD = 128  # pad final layer to a full lane width -> unmasked output stores


def ann_kernel(x_ref,
               w1_ref, b1_ref,
               w2_ref, b2_ref,
               w3_ref, b3_ref,
               w4_ref, b4_ref,
               o_ref):
    # Single intentional downcast: MXU consumes bf16, accumulates f32.
    x = x_ref[...].astype(jnp.bfloat16)

    h = jnp.dot(x, w1_ref[...], preferred_element_type=jnp.float32) + b1_ref[...]
    h = jnp.maximum(h, 0.0)

    h = jnp.dot(h.astype(jnp.bfloat16), w2_ref[...],
                preferred_element_type=jnp.float32) + b2_ref[...]
    h = jnp.maximum(h, 0.0)

    h = jnp.dot(h.astype(jnp.bfloat16), w3_ref[...],
                preferred_element_type=jnp.float32) + b3_ref[...]
    h = jnp.maximum(h, 0.0)

    logits = jnp.dot(h.astype(jnp.bfloat16), w4_ref[...],
                     preferred_element_type=jnp.float32) + b4_ref[...]

    # Sigmoid: exp + approx reciprocal both run on the EUP slot.
    o_ref[...] = pl.reciprocal(1.0 + jnp.exp(-logits), approx=True).astype(o_ref.dtype)


@functools.partial(jax.jit, static_argnames=("block_batch",))
def ann_forward(x, params, *, block_batch=128):
    """x: [B, input_size] f32.  params: 4 tuples (w_bf16 [in,out], b_f32 [1,out])."""
    (w1, b1), (w2, b2), (w3, b3), (w4, b4) = params
    B, in_features = x.shape
    l3 = w4.shape[0]

    # Pad batch up to a multiple of the batch tile.
    n_tiles = pl.cdiv(B, block_batch)
    Bp = n_tiles * block_batch
    if Bp != B:
        x = jnp.pad(x, ((0, Bp - B), (0, 0)))

    # Pad layer-4 to 128 output columns (lane-dense store); column 0 is real.
    w4p = jnp.zeros((l3, OUT_PAD), w4.dtype).at[:, : w4.shape[1]].set(w4)
    b4p = jnp.zeros((1, OUT_PAD), b4.dtype).at[:, : b4.shape[1]].set(b4)

    def resident(arr):
        # Full array as one block, constant index map -> stays VMEM-resident
        # across grid iterations (fetched once).
        return pl.BlockSpec(arr.shape, lambda i: (0, 0))

    out = pl.pallas_call(
        ann_kernel,
        out_shape=jax.ShapeDtypeStruct((Bp, OUT_PAD), jnp.float32),
        grid=(n_tiles,),
        in_specs=[
            pl.BlockSpec((block_batch, in_features), lambda i: (i, 0)),  # streamed x
            resident(w1), resident(b1),
            resident(w2), resident(b2),
            resident(w3), resident(b3),
            resident(w4p), resident(b4p),
        ],
        out_specs=pl.BlockSpec((block_batch, OUT_PAD), lambda i: (i, 0)),
        compiler_params=pltpu.CompilerParams(
            dimension_semantics=("parallel",)),
    )(x, w1, b1, w2, b2, w3, b3, w4p, b4p)

    return out[:B, :1]


def init_params(key, input_size, l1, l2, l3):
    """nn.Linear-style init. Weights stored transposed [in, out] in bf16, biases f32 [1, out]."""
    sizes = [(input_size, l1), (l1, l2), (l2, l3), (l3, 1)]
    params = []
    for i, (fan_in, fan_out) in enumerate(sizes):
        kw, kb = jax.random.split(jax.random.fold_in(key, i))
        bound = 1.0 / jnp.sqrt(fan_in)
        w = jax.random.uniform(kw, (fan_in, fan_out), jnp.float32, -bound, bound)
        b = jax.random.uniform(kb, (1, fan_out), jnp.float32, -bound, bound)
        params.append((w.astype(jnp.bfloat16), b))
    return params


def ann_reference(x, params):
    """Plain-JAX reference (f32 math on the same bf16-quantized weights)."""
    (w1, b1), (w2, b2), (w3, b3), (w4, b4) = params
    f32 = lambda a: a.astype(jnp.float32)
    h = jnp.maximum(x @ f32(w1) + b1, 0.0)
    h = jnp.maximum(h @ f32(w2) + b2, 0.0)
    h = jnp.maximum(h @ f32(w3) + b3, 0.0)
    return jax.nn.sigmoid(h @ f32(w4) + b4)


if __name__ == "__main__":
    key = jax.random.PRNGKey(0)
    input_size, l1, l2, l3 = 32, 64, 32, 16
    kx, kp, kx2 = jax.random.split(key, 3)
    params = init_params(kp, input_size, l1, l2, l3)

    # Small-batch check (single grid point; batch is padded to the 128-row tile).
    batch = 8
    x = jax.random.normal(kx, (batch, input_size), jnp.float32)
    out = jax.block_until_ready(ann_forward(x, params))
    ref = ann_reference(x, params)
    assert out.shape == (batch, 1)
    assert jnp.allclose(out, ref, atol=2e-2, rtol=2e-2), float(jnp.max(jnp.abs(out - ref)))

    # Multi-tile check (grid of 3, exercises the pipelined/streamed path).
    x2 = jax.random.normal(kx2, (384, input_size), jnp.float32)
    out2 = jax.block_until_ready(ann_forward(x2, params))
    ref2 = ann_reference(x2, params)
    assert out2.shape == (384, 1)
    assert jnp.allclose(out2, ref2, atol=2e-2, rtol=2e-2), float(jnp.max(jnp.abs(out2 - ref2)))

    print("KERNEL_OK")
</pallas_src>

<mosaic_0001>
module attributes {stable_mosaic.version = 11 : i64} {
  func.func @ann_kernel(%arg0: i32, %arg1: memref<128x32xf32, #tpu.memory_space<vmem>>, %arg2: memref<32x64xbf16, #tpu.memory_space<vmem>>, %arg3: memref<1x64xf32, #tpu.memory_space<vmem>>, %arg4: memref<64x32xbf16, #tpu.memory_space<vmem>>, %arg5: memref<1x32xf32, #tpu.memory_space<vmem>>, %arg6: memref<32x16xbf16, #tpu.memory_space<vmem>>, %arg7: memref<1x16xf32, #tpu.memory_space<vmem>>, %arg8: memref<16x128xbf16, #tpu.memory_space<vmem>>, %arg9: memref<1x128xf32, #tpu.memory_space<vmem>>, %arg10: memref<128x128xf32, #tpu.memory_space<vmem>>) attributes {dimension_semantics = [#tpu.dimension_semantics<parallel>], iteration_bounds = array<i64: 1>, scalar_prefetch = 0 : i64, scratch_operands = 0 : i64, tpu.core_type = #tpu.core_type<tc>, window_params = [{transform_indices = @transform_0, window_bounds = array<i64: 128, 32>}, {pipeline_mode = #tpu.pipeline_mode<synchronous>, transform_indices = @transform_1, window_bounds = array<i64: 32, 64>}, {pipeline_mode = #tpu.pipeline_mode<synchronous>, transform_indices = @transform_2, window_bounds = array<i64: 1, 64>}, {pipeline_mode = #tpu.pipeline_mode<synchronous>, transform_indices = @transform_3, window_bounds = array<i64: 64, 32>}, {pipeline_mode = #tpu.pipeline_mode<synchronous>, transform_indices = @transform_4, window_bounds = array<i64: 1, 32>}, {pipeline_mode = #tpu.pipeline_mode<synchronous>, transform_indices = @transform_5, window_bounds = array<i64: 32, 16>}, {pipeline_mode = #tpu.pipeline_mode<synchronous>, transform_indices = @transform_6, window_bounds = array<i64: 1, 16>}, {pipeline_mode = #tpu.pipeline_mode<synchronous>, transform_indices = @transform_7, window_bounds = array<i64: 16, 128>}, {pipeline_mode = #tpu.pipeline_mode<synchronous>, transform_indices = @transform_8, window_bounds = array<i64: 1, 128>}, {transform_indices = @transform_9, window_bounds = array<i64: 128, 128>}]} {
    %c0 = arith.constant 0 : index
    %c0_0 = arith.constant 0 : index
    %0 = vector.load %arg1[%c0, %c0_0] : memref<128x32xf32, #tpu.memory_space<vmem>>, vector<128x32xf32>
    %1 = arith.truncf %0 : vector<128x32xf32> to vector<128x32xbf16>
    %c0_1 = arith.constant 0 : index
    %c0_2 = arith.constant 0 : index
    %2 = vector.load %arg2[%c0_1, %c0_2] : memref<32x64xbf16, #tpu.memory_space<vmem>>, vector<32x64xbf16>
    %cst = arith.constant dense<0.000000e+00> : vector<128x64xf32>
    %3 = tpu.matmul %1, %2, %cst {dimension_numbers = #tpu.dot_dimension_numbers<[1], [0], [0], [1], [0, 0, 1, 1], [], []>} : vector<128x32xbf16>, vector<32x64xbf16>, vector<128x64xf32> -> vector<128x64xf32>
    %c0_3 = arith.constant 0 : index
    %c0_4 = arith.constant 0 : index
    %4 = vector.load %arg3[%c0_3, %c0_4] : memref<1x64xf32, #tpu.memory_space<vmem>>, vector<1x64xf32>
    %5 = vector.broadcast %4 : vector<1x64xf32> to vector<128x64xf32>
    %6 = arith.addf %3, %5 : vector<128x64xf32>
    %cst_5 = arith.constant 0.000000e+00 : f32
    %7 = vector.broadcast %cst_5 : f32 to vector<128x64xf32>
    %8 = arith.maximumf %6, %7 : vector<128x64xf32>
    %9 = arith.truncf %8 : vector<128x64xf32> to vector<128x64xbf16>
    %c0_6 = arith.constant 0 : index
    %c0_7 = arith.constant 0 : index
    %10 = vector.load %arg4[%c0_6, %c0_7] : memref<64x32xbf16, #tpu.memory_space<vmem>>, vector<64x32xbf16>
    %cst_8 = arith.constant dense<0.000000e+00> : vector<128x32xf32>
    %11 = tpu.matmul %9, %10, %cst_8 {dimension_numbers = #tpu.dot_dimension_numbers<[1], [0], [0], [1], [0, 0, 1, 1], [], []>} : vector<128x64xbf16>, vector<64x32xbf16>, vector<128x32xf32> -> vector<128x32xf32>
    %c0_9 = arith.constant 0 : index
    %c0_10 = arith.constant 0 : index
    %12 = vector.load %arg5[%c0_9, %c0_10] : memref<1x32xf32, #tpu.memory_space<vmem>>, vector<1x32xf32>
    %13 = vector.broadcast %12 : vector<1x32xf32> to vector<128x32xf32>
    %14 = arith.addf %11, %13 : vector<128x32xf32>
    %cst_11 = arith.constant 0.000000e+00 : f32
    %15 = vector.broadcast %cst_11 : f32 to vector<128x32xf32>
    %16 = arith.maximumf %14, %15 : vector<128x32xf32>
    %17 = arith.truncf %16 : vector<128x32xf32> to vector<128x32xbf16>
    %c0_12 = arith.constant 0 : index
    %c0_13 = arith.constant 0 : index
    %18 = vector.load %arg6[%c0_12, %c0_13] : memref<32x16xbf16, #tpu.memory_space<vmem>>, vector<32x16xbf16>
    %cst_14 = arith.constant dense<0.000000e+00> : vector<128x16xf32>
    %19 = tpu.matmul %17, %18, %cst_14 {dimension_numbers = #tpu.dot_dimension_numbers<[1], [0], [0], [1], [0, 0, 1, 1], [], []>} : vector<128x32xbf16>, vector<32x16xbf16>, vector<128x16xf32> -> vector<128x16xf32>
    %c0_15 = arith.constant 0 : index
    %c0_16 = arith.constant 0 : index
    %20 = vector.load %arg7[%c0_15, %c0_16] : memref<1x16xf32, #tpu.memory_space<vmem>>, vector<1x16xf32>
    %21 = vector.broadcast %20 : vector<1x16xf32> to vector<128x16xf32>
    %22 = arith.addf %19, %21 : vector<128x16xf32>
    %cst_17 = arith.constant 0.000000e+00 : f32
    %23 = vector.broadcast %cst_17 : f32 to vector<128x16xf32>
    %24 = arith.maximumf %22, %23 : vector<128x16xf32>
    %25 = arith.truncf %24 : vector<128x16xf32> to vector<128x16xbf16>
    %c0_18 = arith.constant 0 : index
    %c0_19 = arith.constant 0 : index
    %26 = vector.load %arg8[%c0_18, %c0_19] : memref<16x128xbf16, #tpu.memory_space<vmem>>, vector<16x128xbf16>
    %cst_20 = arith.constant dense<0.000000e+00> : vector<128x128xf32>
    %27 = tpu.matmul %25, %26, %cst_20 {dimension_numbers = #tpu.dot_dimension_numbers<[1], [0], [0], [1], [0, 0, 1, 1], [], []>} : vector<128x16xbf16>, vector<16x128xbf16>, vector<128x128xf32> -> vector<128x128xf32>
    %c0_21 = arith.constant 0 : index
    %c0_22 = arith.constant 0 : index
    %28 = vector.load %arg9[%c0_21, %c0_22] : memref<1x128xf32, #tpu.memory_space<vmem>>, vector<1x128xf32>
    %29 = vector.broadcast %28 : vector<1x128xf32> to vector<128x128xf32>
    %30 = arith.addf %27, %29 : vector<128x128xf32>
    %cst_23 = arith.constant 0.000000e+00 : f32
    %31 = vector.broadcast %cst_23 : f32 to vector<128x128xf32>
    %32 = arith.subf %31, %30 : vector<128x128xf32>
    %33 = math.exp %32 : vector<128x128xf32>
    %cst_24 = arith.constant 1.000000e+00 : f32
    %34 = vector.broadcast %cst_24 : f32 to vector<128x128xf32>
    %35 = arith.addf %34, %33 : vector<128x128xf32>
    %36 = tpu.reciprocal %35 {approx = true} : vector<128x128xf32> -> vector<128x128xf32>
    %c0_25 = arith.constant 0 : index
    %c0_26 = arith.constant 0 : index
    %37 = vector.load %arg10[%c0_25, %c0_26] : memref<128x128xf32, #tpu.memory_space<vmem>>, vector<128x128xf32>
    tpu.vector_store %arg10[%c0_25, %c0_26], %36 {strides = array<i32>} : memref<128x128xf32, #tpu.memory_space<vmem>>, vector<128x128xf32>,
    return
  }
  func.func @transform_0(%arg0: i32) -> (i32, i32) {
    %c0_i32 = arith.constant 0 : i32
    %c0_i32_0 = arith.constant 0 : i32
    return %arg0, %c0_i32 : i32, i32
  }
  func.func @transform_1(%arg0: i32) -> (i32, i32) {
    %c0_i32 = arith.constant 0 : i32
    %c0_i32_0 = arith.constant 0 : i32
    %c0_i32_1 = arith.constant 0 : i32
    return %c0_i32, %c0_i32_0 : i32, i32
  }
  func.func @transform_2(%arg0: i32) -> (i32, i32) {
    %c0_i32 = arith.constant 0 : i32
    %c0_i32_0 = arith.constant 0 : i32
    %c0_i32_1 = arith.constant 0 : i32
    return %c0_i32, %c0_i32_0 : i32, i32
  }
  func.func @transform_3(%arg0: i32) -> (i32, i32) {
    %c0_i32 = arith.constant 0 : i32
    %c0_i32_0 = arith.constant 0 : i32
    %c0_i32_1 = arith.constant 0 : i32
    return %c0_i32, %c0_i32_0 : i32, i32
  }
  func.func @transform_4(%arg0: i32) -> (i32, i32) {
    %c0_i32 = arith.constant 0 : i32
    %c0_i32_0 = arith.constant 0 : i32
    %c0_i32_1 = arith.constant 0 : i32
    return %c0_i32, %c0_i32_0 : i32, i32
  }
  func.func @transform_5(%arg0: i32) -> (i32, i32) {
    %c0_i32 = arith.constant 0 : i32
    %c0_i32_0 = arith.constant 0 : i32
    %c0_i32_1 = arith.constant 0 : i32
    return %c0_i32, %c0_i32_0 : i32, i32
  }
  func.func @transform_6(%arg0: i32) -> (i32, i32) {
    %c0_i32 = arith.constant 0 : i32
    %c0_i32_0 = arith.constant 0 : i32
    %c0_i32_1 = arith.constant 0 : i32
    return %c0_i32, %c0_i32_0 : i32, i32
  }
  func.func @transform_7(%arg0: i32) -> (i32, i32) {
    %c0_i32 = arith.constant 0 : i32
    %c0_i32_0 = arith.constant 0 : i32
    %c0_i32_1 = arith.constant 0 : i32
    return %c0_i32, %c0_i32_0 : i32, i32
  }
  func.func @transform_8(%arg0: i32) -> (i32, i32) {
    %c0_i32 = arith.constant 0 : i32
    %c0_i32_0 = arith.constant 0 : i32
    %c0_i32_1 = arith.constant 0 : i32
    return %c0_i32, %c0_i32_0 : i32, i32
  }
  func.func @transform_9(%arg0: i32) -> (i32, i32) {
    %c0_i32 = arith.constant 0 : i32
    %c0_i32_0 = arith.constant 0 : i32
    return %arg0, %c0_i32 : i32, i32
  }
}

</mosaic_0001>

<bundles_post_ra>
// kernel: ann_forward.1
= control target key start
LH: loop header
LB: loop body
LE: loop exit
PB: predicated region body
PF: predicated region fallthrough
CT: control target
= control target key end

     0   :  { %vm77_vm0 = vcmask 261120   ;;  %vm211_vm1 = vcmask 523264   ;;  %vm438_vm2 = vcmask 130048   ;;  %s1010_s1 = inlined_call_operand.vmem [shape: bf16[32,64], index: 1, kind: input, shape index: {}]   ;;  %s1011_s0 = inlined_call_operand.vmem [shape: f32[128,32], index: 0, kind: input, shape index: {}]   ;;  %s1012_s2 = inlined_call_operand.vmem [shape: f32[1,64], index: 2, kind: input, shape index: {}]   ;;  %s1013_s3 = inlined_call_operand.vmem [shape: bf16[64,32], index: 3, kind: input, shape index: {}]   ;;  %s1014_s4 = inlined_call_operand.vmem [shape: f32[1,32], index: 4, kind: input, shape index: {}]   ;;  %s1015_s5 = inlined_call_operand.vmem [shape: bf16[32,16], index: 5, kind: input, shape index: {}]   ;;  %s1016_s6 = inlined_call_operand.vmem [shape: f32[1,16], index: 6, kind: input, shape index: {}]   ;;  %s1017_s7 = inlined_call_operand.vmem [shape: bf16[16,128], index: 7, kind: input, shape index: {}]   ;;  %s1018_s8 = inlined_call_operand.vmem [shape: f32[1,128], index: 8, kind: input, shape index: {}]   ;;  %s1019_s9 = inlined_call_operand.vmem [shape: f32[128,128], index: 9, kind: output, shape index: {}]  }
   0x1   :  { %v681_v0 = vld [vmem:[%s1010_s1 + $0x8] sm:$0xff]  ;;  %v680_v1 = vld [vmem:[%s1010_s1] sm:$0xff]  ;;  %v35_v5 = vld [vmem:[%s1011_s0 + $0x10] sm:$0xff] }
   0x2   :  { %108 = vmatpush.bf16.msra.mxu0 %v681_v0  ;;  %v33_v2 = vld [vmem:[%s1011_s0] sm:$0xff]  ;;  %v34_v3 = vld [vmem:[%s1011_s0 + $0x8] sm:$0xff]  ;;  %v36_v6 = vld [vmem:[%s1011_s0 + $0x18] sm:$0xff] }
   0x3   :  { %v49_v4 = vpack.c.bf16 %v34_v3, %v33_v2  ;;  %v50_v7 = vpack.c.bf16 %v36_v6, %v35_v5  ;;  %v37_v8 = vld [vmem:[%s1011_s0 + $0x20] sm:$0xff]  ;;  %v38_v9 = vld [vmem:[%s1011_s0 + $0x28] sm:$0xff]  ;;  %v39_v11 = vld [vmem:[%s1011_s0 + $0x30] sm:$0xff] }
   0x4   :  { %v51_v10 = vpack.c.bf16 %v38_v9, %v37_v8  ;;  %v40_v12 = vld [vmem:[%s1011_s0 + $0x38] sm:$0xff]  ;;  %v41_v14 = vld [vmem:[%s1011_s0 + $0x40] sm:$0xff]  ;;  %v42_v15 = vld [vmem:[%s1011_s0 + $0x48] sm:$0xff] }
   0x5   :  { %v52_v13 = vpack.c.bf16 %v40_v12, %v39_v11  ;;  %v53_v16 = vpack.c.bf16 %v42_v15, %v41_v14  ;;  %v43_v17 = vld [vmem:[%s1011_s0 + $0x50] sm:$0xff]  ;;  %v44_v18 = vld [vmem:[%s1011_s0 + $0x58] sm:$0xff]  ;;  %v45_v20 = vld [vmem:[%s1011_s0 + $0x60] sm:$0xff] }
   0x6   :  { %109 = vmatpush.bf16.msra.mxu0 %v680_v1  ;;  %v54_v19 = vpack.c.bf16 %v44_v18, %v43_v17  ;;  %v46_v21 = vld [vmem:[%s1011_s0 + $0x68] sm:$0xff]  ;;  %v685_v22 = vld [vmem:[%s1013_s3 + $0x18] sm:$0xff]  ;;  %v684_v24 = vld [vmem:[%s1013_s3 + $0x10] sm:$0xff] }
   0x7   :  { %v55_v23 = vpack.c.bf16 %v46_v21, %v45_v20  ;;  %240 = vmatpush.bf16.msra.mxu1 %v685_v22  ;;  %v683_v25 = vld [vmem:[%s1013_s3 + $0x8] sm:$0xff]  ;;  %v682_v26 = vld [vmem:[%s1013_s3] sm:$0xff]  ;;  %v47_v27 = vld [vmem:[%s1011_s0 + $0x70] sm:$0xff] }
   0x8   :  { %v48_v28 = vld [vmem:[%s1011_s0 + $0x78] sm:$0xff]  ;;  %v884_v31 = vld [vmem:[%s1012_s2] ss:$0 sm:$0xff]  ;;  %v687_v17 = vld [vmem:[%s1015_s5 + $0x8] sm:$0xff] }
   0x9   :  { %620 = vmatmul.msk.bf16.vlgmr.msra.gmra.mxu0 %vm77_vm0, %v49_v4  ;;  %v56_v29 = vpack.c.bf16 %v48_v28, %v47_v27  ;;  %359 = vmatpush.bf16.msra.mxu2 %v687_v17  ;;  %v686_v18 = vld [vmem:[%s1015_s5] sm:$0xff] }
   0xa   :  { %v688_v17 = vld [vmem:[%s1017_s7] sm:$0xff] }
   0xb   :  { %241 = vmatpush.bf16.msra.mxu1 %v684_v24  ;;  %470 = vmatpush.bf16.msra.mxu3 %v688_v17 }
   0xd   :  { %360 = vmatpush.bf16.msra.mxu2 %v686_v18 }
   0xf   :  { %242 = vmatpush.bf16.msra.mxu1 %v683_v25 }
  0x13   :  { %243 = vmatpush.bf16.msra.mxu1 %v682_v26  ;;  %v690_v26 = vld [vmem:[%s1014_s4] ss:$0 sm:$0xff] }
  0x19   :  { %621 = vmatmul.msk.bf16.gmra.mxu0 %vm77_vm0, %v50_v7 }
  0x29   :  { %622 = vmatmul.msk.bf16.gmra.mxu0 %vm77_vm0, %v51_v10 }
  0x39   :  { %623 = vmatmul.msk.bf16.gmra.mxu0 %vm77_vm0, %v52_v13 }
  0x49   :  { %624 = vmatmul.msk.bf16.gmra.mxu0 %vm77_vm0, %v53_v16 }
  0x59   :  { %625 = vmatmul.msk.bf16.gmra.mxu0 %vm77_vm0, %v54_v19 }
  0x69   :  { %626 = vmatmul.msk.bf16.gmra.mxu0 %vm77_vm0, %v55_v23 }
  0x79   :  { %627 = vmatmul.msk.bf16.gmra.mxu0 %vm77_vm0, %v56_v29 }
  0x86   :  { %v111_v30 = vpop.f32.mrf.mxu0 }
  0x87   :  { %v112_v32 = vadd.f32 %v884_v31, %v111_v30 }
  0x89   :  { %v151_v35 = vmax.f32 %v112_v32, 0.0 }
  0x8e   :  { %v113_v33 = vpop.f32.mrf.mxu0 }
  0x8f   :  { %v114_v34 = vadd.f32 %v884_v31, %v113_v33 }
  0x91   :  { %v152_v36 = vmax.f32 %v114_v34, 0.0 }
  0x93   :  { %v167_v37 = vpack.c.bf16 %v152_v36, %v151_v35 }
  0x95   :  { %644 = vmatmul.msk.bf16.vlgmr.msra.gmra.mxu1 %vm211_vm1, %v167_v37 }
  0x96   :  { %v116_v38 = vpop.f32.mrf.mxu0 }
  0x97   :  { %v117_v39 = vadd.f32 %v884_v31, %v116_v38 }
  0x99   :  { %v153_v42 = vmax.f32 %v117_v39, 0.0 }
  0x9e   :  { %v118_v40 = vpop.f32.mrf.mxu0 }
  0x9f   :  { %v119_v41 = vadd.f32 %v884_v31, %v118_v40 }
  0xa1   :  { %v154_v43 = vmax.f32 %v119_v41, 0.0 }
  0xa3   :  { %v168_v44 = vpack.c.bf16 %v154_v43, %v153_v42 }
  0xa5   :  { %645 = vmatmul.msk.bf16.gmra.mxu1 %vm211_vm1, %v168_v44 }
  0xa6   :  { %v121_v45 = vpop.f32.mrf.mxu0 }
  0xa7   :  { %v122_v46 = vadd.f32 %v884_v31, %v121_v45 }
  0xa9   :  { %v155_v49 = vmax.f32 %v122_v46, 0.0 }
  0xae   :  { %v123_v47 = vpop.f32.mrf.mxu0 }
  0xaf   :  { %v124_v48 = vadd.f32 %v884_v31, %v123_v47 }
  0xb1   :  { %v156_v50 = vmax.f32 %v124_v48, 0.0 }
  0xb3   :  { %v169_v51 = vpack.c.bf16 %v156_v50, %v155_v49 }
  0xb5   :  { %646 = vmatmul.msk.bf16.gmra.mxu1 %vm211_vm1, %v169_v51 }
  0xb6   :  { %v126_v52 = vpop.f32.mrf.mxu0 }
  0xb7   :  { %v127_v53 = vadd.f32 %v884_v31, %v126_v52 }
  0xb9   :  { %v157_v56 = vmax.f32 %v127_v53, 0.0 }
  0xbe   :  { %v128_v54 = vpop.f32.mrf.mxu0 }
  0xbf   :  { %v129_v55 = vadd.f32 %v884_v31, %v128_v54 }
  0xc1   :  { %v158_v57 = vmax.f32 %v129_v55, 0.0 }
  0xc3   :  { %v170_v58 = vpack.c.bf16 %v158_v57, %v157_v56 }
  0xc5   :  { %647 = vmatmul.msk.bf16.gmra.mxu1 %vm211_vm1, %v170_v58 }
  0xc6   :  { %v131_v59 = vpop.f32.mrf.mxu0 }
  0xc7   :  { %v132_v60 = vadd.f32 %v884_v31, %v131_v59 }
  0xc9   :  { %v159_v63 = vmax.f32 %v132_v60, 0.0 }
  0xce   :  { %v133_v61 = vpop.f32.mrf.mxu0 }
  0xcf   :  { %v134_v62 = vadd.f32 %v884_v31, %v133_v61 }
  0xd1   :  { %v160_v0 = vmax.f32 %v134_v62, 0.0 }
  0xd3   :  { %v171_v1 = vpack.c.bf16 %v160_v0, %v159_v63 }
  0xd5   :  { %648 = vmatmul.msk.bf16.gmra.mxu1 %vm211_vm1, %v171_v1 }
  0xd6   :  { %v136_v2 = vpop.f32.mrf.mxu0 }
  0xd7   :  { %v137_v3 = vadd.f32 %v884_v31, %v136_v2 }
  0xd9   :  { %v161_v6 = vmax.f32 %v137_v3, 0.0 }
  0xde   :  { %v138_v4 = vpop.f32.mrf.mxu0 }
  0xdf   :  { %v139_v5 = vadd.f32 %v884_v31, %v138_v4 }
  0xe1   :  { %v162_v7 = vmax.f32 %v139_v5, 0.0 }
  0xe3   :  { %v172_v8 = vpack.c.bf16 %v162_v7, %v161_v6 }
  0xe5   :  { %649 = vmatmul.msk.bf16.gmra.mxu1 %vm211_vm1, %v172_v8 }
  0xe6   :  { %v141_v9 = vpop.f32.mrf.mxu0 }
  0xe7   :  { %v142_v10 = vadd.f32 %v884_v31, %v141_v9 }
  0xe9   :  { %v163_v13 = vmax.f32 %v142_v10, 0.0 }
  0xee   :  { %v143_v11 = vpop.f32.mrf.mxu0 }
  0xef   :  { %v144_v12 = vadd.f32 %v884_v31, %v143_v11 }
  0xf1   :  { %v164_v14 = vmax.f32 %v144_v12, 0.0 }
  0xf3   :  { %v173_v15 = vpack.c.bf16 %v164_v14, %v163_v13 }
  0xf5   :  { %650 = vmatmul.msk.bf16.gmra.mxu1 %vm211_vm1, %v173_v15 }
  0xf6   :  { %v146_v16 = vpop.f32.mrf.mxu0 }
  0xf7   :  { %v147_v19 = vadd.f32 %v884_v31, %v146_v16 }
  0xf9   :  { %v165_v22 = vmax.f32 %v147_v19, 0.0 }
  0xfe   :  { %v148_v20 = vpop.f32.mrf.mxu0 }
  0xff   :  { %v149_v21 = vadd.f32 %v884_v31, %v148_v20  ;;  %v691_v20 = vld [vmem:[%s1016_s6] ss:$0 sm:$0xff] }
 0x101   :  { %v166_v23 = vmax.f32 %v149_v21, 0.0 }
 0x103   :  { %v174_v24 = vpack.c.bf16 %v166_v23, %v165_v22 }
 0x105   :  { %651 = vmatmul.msk.bf16.gmra.mxu1 %vm211_vm1, %v174_v24 }
 0x112   :  { %v245_v25 = vpop.f32.mrf.mxu1 }
 0x113   :  { %v246_v27 = vadd.f32 %v690_v26, %v245_v25 }
 0x115   :  { %v285_v30 = vmax.f32 %v246_v27, 0.0 }
 0x11a   :  { %v247_v28 = vpop.f32.mrf.mxu1 }
 0x11b   :  { %v248_v29 = vadd.f32 %v690_v26, %v247_v28 }
 0x11d   :  { %v286_v32 = vmax.f32 %v248_v29, 0.0 }
 0x11f   :  { %v301_v33 = vpack.c.bf16 %v286_v32, %v285_v30 }
 0x121   :  { %660 = vmatmul.msk.bf16.vlgmr.msra.gmra.mxu2 %vm77_vm0, %v301_v33 }
 0x122   :  { %v250_v34 = vpop.f32.mrf.mxu1 }
 0x123   :  { %v251_v31 = vadd.f32 %v690_v26, %v250_v34 }
 0x125   :  { %v287_v37 = vmax.f32 %v251_v31, 0.0 }
 0x12a   :  { %v252_v35 = vpop.f32.mrf.mxu1 }
 0x12b   :  { %v253_v36 = vadd.f32 %v690_v26, %v252_v35 }
 0x12d   :  { %v288_v38 = vmax.f32 %v253_v36, 0.0 }
 0x12f   :  { %v302_v39 = vpack.c.bf16 %v288_v38, %v287_v37 }
 0x131   :  { %661 = vmatmul.msk.bf16.gmra.mxu2 %vm77_vm0, %v302_v39 }
 0x132   :  { %v255_v40 = vpop.f32.mrf.mxu1 }
 0x133   :  { %v256_v41 = vadd.f32 %v690_v26, %v255_v40 }
 0x135   :  { %v289_v44 = vmax.f32 %v256_v41, 0.0 }
 0x13a   :  { %v257_v42 = vpop.f32.mrf.mxu1 }
 0x13b   :  { %v258_v43 = vadd.f32 %v690_v26, %v257_v42 }
 0x13d   :  { %v290_v45 = vmax.f32 %v258_v43, 0.0 }
 0x13f   :  { %v303_v46 = vpack.c.bf16 %v290_v45, %v289_v44 }
 0x141   :  { %662 = vmatmul.msk.bf16.gmra.mxu2 %vm77_vm0, %v303_v46 }
 0x142   :  { %v260_v47 = vpop.f32.mrf.mxu1 }
 0x143   :  { %v261_v48 = vadd.f32 %v690_v26, %v260_v47 }
 0x145   :  { %v291_v51 = vmax.f32 %v261_v48, 0.0 }
 0x14a   :  { %v262_v49 = vpop.f32.mrf.mxu1 }
 0x14b   :  { %v263_v50 = vadd.f32 %v690_v26, %v262_v49 }
 0x14d   :  { %v292_v52 = vmax.f32 %v263_v50, 0.0 }
 0x14f   :  { %v304_v53 = vpack.c.bf16 %v292_v52, %v291_v51 }
 0x151   :  { %663 = vmatmul.msk.bf16.gmra.mxu2 %vm77_vm0, %v304_v53 }
 0x152   :  { %v265_v54 = vpop.f32.mrf.mxu1 }
 0x153   :  { %v266_v55 = vadd.f32 %v690_v26, %v265_v54 }
 0x155   :  { %v293_v58 = vmax.f32 %v266_v55, 0.0 }
 0x15a   :  { %v267_v56 = vpop.f32.mrf.mxu1 }
 0x15b   :  { %v268_v57 = vadd.f32 %v690_v26, %v267_v56 }
 0x15d   :  { %v294_v59 = vmax.f32 %v268_v57, 0.0 }
 0x15f   :  { %v305_v60 = vpack.c.bf16 %v294_v59, %v293_v58 }
 0x161   :  { %664 = vmatmul.msk.bf16.gmra.mxu2 %vm77_vm0, %v305_v60 }
 0x162   :  { %v270_v61 = vpop.f32.mrf.mxu1 }
 0x163   :  { %v271_v62 = vadd.f32 %v690_v26, %v270_v61 }
 0x165   :  { %v295_v1 = vmax.f32 %v271_v62, 0.0 }
 0x16a   :  { %v272_v63 = vpop.f32.mrf.mxu1 }
 0x16b   :  { %v273_v0 = vadd.f32 %v690_v26, %v272_v63 }
 0x16d   :  { %v296_v2 = vmax.f32 %v273_v0, 0.0 }
 0x16f   :  { %v306_v3 = vpack.c.bf16 %v296_v2, %v295_v1 }
 0x171   :  { %665 = vmatmul.msk.bf16.gmra.mxu2 %vm77_vm0, %v306_v3 }
 0x172   :  { %v275_v4 = vpop.f32.mrf.mxu1 }
 0x173   :  { %v276_v5 = vadd.f32 %v690_v26, %v275_v4 }
 0x175   :  { %v297_v8 = vmax.f32 %v276_v5, 0.0 }
 0x17a   :  { %v277_v6 = vpop.f32.mrf.mxu1 }
 0x17b   :  { %v278_v7 = vadd.f32 %v690_v26, %v277_v6 }
 0x17d   :  { %v298_v9 = vmax.f32 %v278_v7, 0.0 }
 0x17f   :  { %v307_v10 = vpack.c.bf16 %v298_v9, %v297_v8 }
 0x181   :  { %666 = vmatmul.msk.bf16.gmra.mxu2 %vm77_vm0, %v307_v10 }
 0x182   :  { %v280_v11 = vpop.f32.mrf.mxu1 }
 0x183   :  { %v281_v12 = vadd.f32 %v690_v26, %v280_v11 }
 0x185   :  { %v299_v15 = vmax.f32 %v281_v12, 0.0  ;;  %v944_v12 = vld [vmem:[%s1018_s8] ss:$0 sm:$0xff] }
 0x18a   :  { %v282_v13 = vpop.f32.mrf.mxu1 }
 0x18b   :  { %v283_v14 = vadd.f32 %v690_v26, %v282_v13 }
 0x18d   :  { %v300_v16 = vmax.f32 %v283_v14, 0.0 }
 0x18f   :  { %v308_v18 = vpack.c.bf16 %v300_v16, %v299_v15 }
 0x191   :  { %667 = vmatmul.msk.bf16.gmra.mxu2 %vm77_vm0, %v308_v18 }
 0x1a4   :  { %v362_v19 = vpop.f32.mrf.mxu2 }
 0x1a5   :  { %v363_v21 = vadd.f32 %v691_v20, %v362_v19 }
 0x1a7   :  { %v402_v24 = vmax.f32 %v363_v21, 0.0 }
 0x1ac   :  { %v364_v22 = vpop.f32.mrf.mxu2 }
 0x1ad   :  { %v365_v23 = vadd.f32 %v691_v20, %v364_v22 }
 0x1af   :  { %v403_v25 = vmax.f32 %v365_v23, 0.0 }
 0x1b1   :  { %v418_v26 = vpack.c.bf16 %v403_v25, %v402_v24 }
 0x1b3   :  { %672 = vmatmul.msk.bf16.vlgmr.msra.gmra.mxu3 %vm438_vm2, %v418_v26 }
 0x1b4   :  { %v367_v27 = vpop.f32.mrf.mxu2 }
 0x1b5   :  { %v368_v28 = vadd.f32 %v691_v20, %v367_v27 }
 0x1b7   :  { %v404_v32 = vmax.f32 %v368_v28, 0.0 }
 0x1bc   :  { %v369_v29 = vpop.f32.mrf.mxu2 }
 0x1bd   :  { %v370_v30 = vadd.f32 %v691_v20, %v369_v29 }
 0x1bf   :  { %v405_v33 = vmax.f32 %v370_v30, 0.0 }
 0x1c1   :  { %v419_v34 = vpack.c.bf16 %v405_v33, %v404_v32 }
 0x1c3   :  { %673 = vmatmul.msk.bf16.gmra.mxu3 %vm438_vm2, %v419_v34 }
 0x1c4   :  { %v372_v31 = vpop.f32.mrf.mxu2 }
 0x1c5   :  { %v373_v35 = vadd.f32 %v691_v20, %v372_v31 }
 0x1c7   :  { %v406_v38 = vmax.f32 %v373_v35, 0.0 }
 0x1cc   :  { %v374_v36 = vpop.f32.mrf.mxu2 }
 0x1cd   :  { %v375_v37 = vadd.f32 %v691_v20, %v374_v36 }
 0x1cf   :  { %v407_v39 = vmax.f32 %v375_v37, 0.0 }
 0x1d1   :  { %v420_v40 = vpack.c.bf16 %v407_v39, %v406_v38 }
 0x1d3   :  { %674 = vmatmul.msk.bf16.gmra.mxu3 %vm438_vm2, %v420_v40 }
 0x1d4   :  { %v377_v41 = vpop.f32.mrf.mxu2 }
 0x1d5   :  { %v378_v42 = vadd.f32 %v691_v20, %v377_v41 }
 0x1d7   :  { %v408_v45 = vmax.f32 %v378_v42, 0.0 }
 0x1dc   :  { %v379_v43 = vpop.f32.mrf.mxu2 }
 0x1dd   :  { %v380_v44 = vadd.f32 %v691_v20, %v379_v43 }
 0x1df   :  { %v409_v46 = vmax.f32 %v380_v44, 0.0 }
 0x1e1   :  { %v421_v47 = vpack.c.bf16 %v409_v46, %v408_v45 }
 0x1e3   :  { %675 = vmatmul.msk.bf16.gmra.mxu3 %vm438_vm2, %v421_v47 }
 0x1e4   :  { %v382_v48 = vpop.f32.mrf.mxu2 }
 0x1e5   :  { %v383_v49 = vadd.f32 %v691_v20, %v382_v48 }
 0x1e7   :  { %v410_v52 = vmax.f32 %v383_v49, 0.0 }
 0x1ec   :  { %v384_v50 = vpop.f32.mrf.mxu2 }
 0x1ed   :  { %v385_v51 = vadd.f32 %v691_v20, %v384_v50 }
 0x1ef   :  { %v411_v53 = vmax.f32 %v385_v51, 0.0 }
 0x1f1   :  { %v422_v54 = vpack.c.bf16 %v411_v53, %v410_v52 }
 0x1f3   :  { %676 = vmatmul.msk.bf16.gmra.mxu3 %vm438_vm2, %v422_v54 }
 0x1f4   :  { %v387_v55 = vpop.f32.mrf.mxu2 }
 0x1f5   :  { %v388_v56 = vadd.f32 %v691_v20, %v387_v55 }
 0x1f7   :  { %v412_v59 = vmax.f32 %v388_v56, 0.0 }
 0x1fc   :  { %v389_v57 = vpop.f32.mrf.mxu2 }
 0x1fd   :  { %v390_v58 = vadd.f32 %v691_v20, %v389_v57 }
 0x1ff   :  { %v413_v60 = vmax.f32 %v390_v58, 0.0 }
 0x201   :  { %v423_v61 = vpack.c.bf16 %v413_v60, %v412_v59 }
 0x203   :  { %677 = vmatmul.msk.bf16.gmra.mxu3 %vm438_vm2, %v423_v61 }
 0x204   :  { %v392_v62 = vpop.f32.mrf.mxu2 }
 0x205   :  { %v393_v63 = vadd.f32 %v691_v20, %v392_v62 }
 0x207   :  { %v414_v2 = vmax.f32 %v393_v63, 0.0 }
 0x20c   :  { %v394_v0 = vpop.f32.mrf.mxu2 }
 0x20d   :  { %v395_v1 = vadd.f32 %v691_v20, %v394_v0 }
 0x20f   :  { %v415_v3 = vmax.f32 %v395_v1, 0.0 }
 0x211   :  { %v424_v4 = vpack.c.bf16 %v415_v3, %v414_v2 }
 0x213   :  { %678 = vmatmul.msk.bf16.gmra.mxu3 %vm438_vm2, %v424_v4 }
 0x214   :  { %v397_v5 = vpop.f32.mrf.mxu2 }
 0x215   :  { %v398_v6 = vadd.f32 %v691_v20, %v397_v5 }
 0x217   :  { %v416_v9 = vmax.f32 %v398_v6, 0.0 }
 0x21c   :  { %v399_v7 = vpop.f32.mrf.mxu2 }
 0x21d   :  { %v400_v8 = vadd.f32 %v691_v20, %v399_v7 }
 0x21f   :  { %v417_v10 = vmax.f32 %v400_v8, 0.0 }
 0x221   :  { %v425_v11 = vpack.c.bf16 %v417_v10, %v416_v9 }
 0x223   :  { %679 = vmatmul.msk.bf16.gmra.mxu3 %vm438_vm2, %v425_v11 }
 0x236   :  { %v472_v13 = vpop.f32.mrf.mxu3 }
 0x237   :  { %v473_v14 = vadd.f32 %v944_v12, %v472_v13 }
 0x239   :  { %v512_v15 = vsub.f32 0.0, %v473_v14 }
 0x23b   :  { %v528_v16 = vmul.f32 1.442695, %v512_v15 }
 0x23d   :  { %693 = vpow2.f32 %v528_v16 }
 0x23e   :  { %v474_v17 = vpop.f32.mrf.mxu3 }
 0x23f   :  { %v475_v18 = vadd.f32 %v944_v12, %v474_v17 }
 0x241   :  { %v513_v19 = vsub.f32 0.0, %v475_v18 }
 0x243   :  { %v694_v20 = vpop.eup %693  ;;  %v530_v21 = vmul.f32 1.442695, %v513_v19 }
 0x244   :  { %v560_v22 = vadd.f32 1.0, %v694_v20 }
 0x245   :  { %695 = vpow2.f32 %v530_v21 }
 0x246   :  { %697 = vrcp.f32 %v560_v22  ;;  %v477_v23 = vpop.f32.mrf.mxu3 }
 0x247   :  { %v478_v24 = vadd.f32 %v944_v12, %v477_v23 }
 0x249   :  { %v514_v25 = vsub.f32 0.0, %v478_v24 }
 0x24b   :  { %v696_v26 = vpop.eup %695  ;;  %v532_v27 = vmul.f32 1.442695, %v514_v25 }
 0x24c   :  { %v698_v28 = vpop.eup %697  ;;  %v561_v29 = vadd.f32 1.0, %v696_v26 }
 0x24d   :  { %592 = vst [vmem:[%s1019_s9] sm:$0xff] %v698_v28  ;;  %699 = vpow2.f32 %v532_v27 }
 0x24e   :  { %701 = vrcp.f32 %v561_v29  ;;  %v479_v30 = vpop.f32.mrf.mxu3 }
 0x24f   :  { %v480_v32 = vadd.f32 %v944_v12, %v479_v30 }
 0x251   :  { %v515_v33 = vsub.f32 0.0, %v480_v32 }
 0x253   :  { %v700_v34 = vpop.eup %699  ;;  %v534_v31 = vmul.f32 1.442695, %v515_v33 }
 0x254   :  { %v702_v35 = vpop.eup %701  ;;  %v562_v36 = vadd.f32 1.0, %v700_v34 }
 0x255   :  { %593 = vst [vmem:[%s1019_s9 + $0x8] sm:$0xff] %v702_v35  ;;  %703 = vpow2.f32 %v534_v31 }
 0x256   :  { %705 = vrcp.f32 %v562_v36  ;;  %v482_v37 = vpop.f32.mrf.mxu3 }
 0x257   :  { %v483_v38 = vadd.f32 %v944_v12, %v482_v37 }
 0x259   :  { %v516_v39 = vsub.f32 0.0, %v483_v38 }
 0x25b   :  { %v704_v40 = vpop.eup %703  ;;  %v536_v41 = vmul.f32 1.442695, %v516_v39 }
 0x25c   :  { %v706_v42 = vpop.eup %705  ;;  %v563_v43 = vadd.f32 1.0, %v704_v40 }
 0x25d   :  { %594 = vst [vmem:[%s1019_s9 + $0x10] sm:$0xff] %v706_v42  ;;  %707 = vpow2.f32 %v536_v41 }
 0x25e   :  { %709 = vrcp.f32 %v563_v43  ;;  %v484_v44 = vpop.f32.mrf.mxu3 }
 0x25f   :  { %v485_v45 = vadd.f32 %v944_v12, %v484_v44 }
 0x261   :  { %v517_v46 = vsub.f32 0.0, %v485_v45 }
 0x263   :  { %v708_v47 = vpop.eup %707  ;;  %v538_v48 = vmul.f32 1.442695, %v517_v46 }
 0x264   :  { %v710_v49 = vpop.eup %709  ;;  %v564_v50 = vadd.f32 1.0, %v708_v47 }
 0x265   :  { %595 = vst [vmem:[%s1019_s9 + $0x18] sm:$0xff] %v710_v49  ;;  %711 = vpow2.f32 %v538_v48 }
 0x266   :  { %713 = vrcp.f32 %v564_v50  ;;  %v487_v51 = vpop.f32.mrf.mxu3 }
 0x267   :  { %v488_v52 = vadd.f32 %v944_v12, %v487_v51 }
 0x269   :  { %v518_v53 = vsub.f32 0.0, %v488_v52 }
 0x26b   :  { %v712_v54 = vpop.eup %711  ;;  %v540_v55 = vmul.f32 1.442695, %v518_v53 }
 0x26c   :  { %v714_v56 = vpop.eup %713  ;;  %v565_v57 = vadd.f32 1.0, %v712_v54 }
 0x26d   :  { %596 = vst [vmem:[%s1019_s9 + $0x20] sm:$0xff] %v714_v56  ;;  %715 = vpow2.f32 %v540_v55 }
 0x26e   :  { %717 = vrcp.f32 %v565_v57  ;;  %v489_v58 = vpop.f32.mrf.mxu3 }
 0x26f   :  { %v490_v59 = vadd.f32 %v944_v12, %v489_v58 }
 0x271   :  { %v519_v60 = vsub.f32 0.0, %v490_v59 }
 0x273   :  { %v716_v61 = vpop.eup %715  ;;  %v542_v62 = vmul.f32 1.442695, %v519_v60 }
 0x274   :  { %v718_v63 = vpop.eup %717  ;;  %v566_v0 = vadd.f32 1.0, %v716_v61 }
 0x275   :  { %597 = vst [vmem:[%s1019_s9 + $0x28] sm:$0xff] %v718_v63  ;;  %719 = vpow2.f32 %v542_v62 }
 0x276   :  { %721 = vrcp.f32 %v566_v0  ;;  %v492_v1 = vpop.f32.mrf.mxu3 }
 0x277   :  { %v493_v2 = vadd.f32 %v944_v12, %v492_v1 }
 0x279   :  { %v520_v3 = vsub.f32 0.0, %v493_v2 }
 0x27b   :  { %v720_v4 = vpop.eup %719  ;;  %v544_v5 = vmul.f32 1.442695, %v520_v3 }
 0x27c   :  { %v722_v6 = vpop.eup %721  ;;  %v567_v7 = vadd.f32 1.0, %v720_v4 }
 0x27d   :  { %598 = vst [vmem:[%s1019_s9 + $0x30] sm:$0xff] %v722_v6  ;;  %723 = vpow2.f32 %v544_v5 }
 0x27e   :  { %725 = vrcp.f32 %v567_v7  ;;  %v494_v8 = vpop.f32.mrf.mxu3 }
 0x27f   :  { %v495_v9 = vadd.f32 %v944_v12, %v494_v8 }
 0x281   :  { %v521_v10 = vsub.f32 0.0, %v495_v9 }
 0x283   :  { %v724_v11 = vpop.eup %723  ;;  %v546_v13 = vmul.f32 1.442695, %v521_v10 }
 0x284   :  { %v726_v14 = vpop.eup %725  ;;  %v568_v15 = vadd.f32 1.0, %v724_v11 }
 0x285   :  { %599 = vst [vmem:[%s1019_s9 + $0x38] sm:$0xff] %v726_v14  ;;  %727 = vpow2.f32 %v546_v13 }
 0x286   :  { %729 = vrcp.f32 %v568_v15  ;;  %v497_v16 = vpop.f32.mrf.mxu3 }
 0x287   :  { %v498_v17 = vadd.f32 %v944_v12, %v497_v16 }
 0x289   :  { %v522_v18 = vsub.f32 0.0, %v498_v17 }
 0x28b   :  { %v728_v19 = vpop.eup %727  ;;  %v548_v20 = vmul.f32 1.442695, %v522_v18 }
 0x28c   :  { %v730_v21 = vpop.eup %729  ;;  %v569_v22 = vadd.f32 1.0, %v728_v19 }
 0x28d   :  { %600 = vst [vmem:[%s1019_s9 + $0x40] sm:$0xff] %v730_v21  ;;  %731 = vpow2.f32 %v548_v20 }
 0x28e   :  { %733 = vrcp.f32 %v569_v22  ;;  %v499_v23 = vpop.f32.mrf.mxu3 }
 0x28f   :  { %v500_v24 = vadd.f32 %v944_v12, %v499_v23 }
 0x291   :  { %v523_v25 = vsub.f32 0.0, %v500_v24 }
 0x293   :  { %v732_v26 = vpop.eup %731  ;;  %v550_v27 = vmul.f32 1.442695, %v523_v25 }
 0x294   :  { %v734_v28 = vpop.eup %733  ;;  %v570_v29 = vadd.f32 1.0, %v732_v26 }
 0x295   :  { %601 = vst [vmem:[%s1019_s9 + $0x48] sm:$0xff] %v734_v28  ;;  %735 = vpow2.f32 %v550_v27 }
 0x296   :  { %737 = vrcp.f32 %v570_v29  ;;  %v502_v30 = vpop.f32.mrf.mxu3 }
 0x297   :  { %v503_v32 = vadd.f32 %v944_v12, %v502_v30 }
 0x299   :  { %v524_v33 = vsub.f32 0.0, %v503_v32 }
 0x29b   :  { %v736_v34 = vpop.eup %735  ;;  %v552_v31 = vmul.f32 1.442695, %v524_v33 }
 0x29c   :  { %v738_v35 = vpop.eup %737  ;;  %v571_v36 = vadd.f32 1.0, %v736_v34 }
 0x29d   :  { %602 = vst [vmem:[%s1019_s9 + $0x50] sm:$0xff] %v738_v35  ;;  %739 = vpow2.f32 %v552_v31 }
 0x29e   :  { %741 = vrcp.f32 %v571_v36  ;;  %v504_v37 = vpop.f32.mrf.mxu3 }
 0x29f   :  { %v505_v38 = vadd.f32 %v944_v12, %v504_v37 }
 0x2a1   :  { %v525_v39 = vsub.f32 0.0, %v505_v38 }
 0x2a3   :  { %v740_v40 = vpop.eup %739  ;;  %v554_v41 = vmul.f32 1.442695, %v525_v39 }
 0x2a4   :  { %v742_v42 = vpop.eup %741  ;;  %v572_v43 = vadd.f32 1.0, %v740_v40 }
 0x2a5   :  { %603 = vst [vmem:[%s1019_s9 + $0x58] sm:$0xff] %v742_v42  ;;  %743 = vpow2.f32 %v554_v41 }
 0x2a6   :  { %745 = vrcp.f32 %v572_v43  ;;  %v507_v44 = vpop.f32.mrf.mxu3 }
 0x2a7   :  { %v508_v45 = vadd.f32 %v944_v12, %v507_v44 }
 0x2a9   :  { %v526_v46 = vsub.f32 0.0, %v508_v45 }
 0x2ab   :  { %v744_v47 = vpop.eup %743  ;;  %v556_v48 = vmul.f32 1.442695, %v526_v46 }
 0x2ac   :  { %v746_v49 = vpop.eup %745  ;;  %v573_v50 = vadd.f32 1.0, %v744_v47 }
 0x2ad   :  { %604 = vst [vmem:[%s1019_s9 + $0x60] sm:$0xff] %v746_v49  ;;  %747 = vpow2.f32 %v556_v48 }
 0x2ae   :  { %749 = vrcp.f32 %v573_v50  ;;  %v509_v51 = vpop.f32.mrf.mxu3 }
 0x2af   :  { %v510_v52 = vadd.f32 %v944_v12, %v509_v51 }
 0x2b1   :  { %v527_v53 = vsub.f32 0.0, %v510_v52 }
 0x2b3   :  { %v748_v54 = vpop.eup %747  ;;  %v558_v55 = vmul.f32 1.442695, %v527_v53 }
 0x2b4   :  { %v750_v56 = vpop.eup %749  ;;  %v574_v57 = vadd.f32 1.0, %v748_v54 }
 0x2b5   :  { %605 = vst [vmem:[%s1019_s9 + $0x68] sm:$0xff] %v750_v56  ;;  %751 = vpow2.f32 %v558_v55 }
 0x2b6   :  { %753 = vrcp.f32 %v574_v57 }
 0x2bb   :  { %v752_v58 = vpop.eup %751 }
 0x2bc   :  { %v754_v59 = vpop.eup %753  ;;  %v575_v60 = vadd.f32 1.0, %v752_v58 }
 0x2bd   :  { %606 = vst [vmem:[%s1019_s9 + $0x70] sm:$0xff] %v754_v59 }
 0x2be   :  { %755 = vrcp.f32 %v575_v60 }
 0x2c4   :  { %v756_v12 = vpop.eup %755 }
 0x2c5   :  { %607 = vst [vmem:[%s1019_s9 + $0x78] sm:$0xff] %v756_v12 }

</bundles_post_ra>
